<compile_context>
chip_gen: v7x
topology: tpu7x:2x2x1
jax: 0.10.0
libtpu: 0.0.40
codegen_flags: <defaults>
</compile_context>

<pallas_src>
import jax
import jax.numpy as jnp
from jax import lax
from jax.experimental import pallas as pl
from jax.experimental.pallas import tpu as pltpu


def _fullspec(shape):
    """BlockSpec covering the whole array (grid=(1,) kernels)."""
    zeros = (0,) * len(shape)
    return pl.BlockSpec(shape, lambda i: zeros)


# ---------------------------------------------------------------------------
# universal_sentence_embedding: masked sum over tokens / sqrt(count)
# ---------------------------------------------------------------------------
def _use_kernel(sent_ref, mask_ref, out_ref):
    s = sent_ref[0]                                    # (L, E)
    m = mask_ref[0]                                    # (L, 1)
    sums = jnp.sum(s * m, axis=0, keepdims=True)       # (1, E)
    cnt = jnp.sum(m, axis=0, keepdims=True)            # (1, 1)
    out_ref[0] = sums / jnp.sqrt(cnt)


def universal_sentence_embedding(sentences, mask):
    """sentences (N, L, E) f32, mask (N, L) -> (N, E)."""
    N, L, E = sentences.shape
    mask3 = mask.reshape(N, L, 1).astype(jnp.float32)
    out = pl.pallas_call(
        _use_kernel,
        out_shape=jax.ShapeDtypeStruct((N, 1, E), jnp.float32),
        grid=(N,),
        in_specs=[
            pl.BlockSpec((1, L, E), lambda n: (n, 0, 0)),
            pl.BlockSpec((1, L, 1), lambda n: (n, 0, 0)),
        ],
        out_specs=pl.BlockSpec((1, 1, E), lambda n: (n, 0, 0)),
        compiler_params=pltpu.CompilerParams(dimension_semantics=("parallel",)),
    )(sentences.astype(jnp.float32), mask3)
    return out.reshape(N, E)


# ---------------------------------------------------------------------------
# act_classifier: relu(relu(x @ W1 + b1) @ W2 + b2)
# ---------------------------------------------------------------------------
def _mlp_kernel(x_ref, w1_ref, b1_ref, w2_ref, b2_ref, out_ref):
    h = jnp.maximum(
        jnp.dot(x_ref[...], w1_ref[...], preferred_element_type=jnp.float32)
        + b1_ref[...], 0.0)
    out_ref[...] = jnp.maximum(
        jnp.dot(h, w2_ref[...], preferred_element_type=jnp.float32)
        + b2_ref[...], 0.0)


def mlp_forward(x, w1, b1, w2, b2):
    N, D = x.shape
    Hd = w1.shape[1]
    C = w2.shape[1]
    return pl.pallas_call(
        _mlp_kernel,
        out_shape=jax.ShapeDtypeStruct((N, C), jnp.float32),
        grid=(1,),
        in_specs=[_fullspec((N, D)), _fullspec((D, Hd)), _fullspec((1, Hd)),
                  _fullspec((Hd, C)), _fullspec((1, C))],
        out_specs=_fullspec((N, C)),
    )(x, w1, b1, w2, b2)


# ---------------------------------------------------------------------------
# 2-layer GRU (batch_first, zero initial state, PyTorch gate math)
# ---------------------------------------------------------------------------
def _gru2_kernel(x_ref, wih0_ref, whh0_ref, bih0_ref, bhh0_ref,
                 wih1_ref, whh1_ref, bih1_ref, bhh1_ref,
                 out_ref, h0_ref, h1_ref):
    h0_ref[...] = jnp.zeros_like(h0_ref)
    h1_ref[...] = jnp.zeros_like(h1_ref)

    wih0 = wih0_ref[...]; whh0 = whh0_ref[...]
    bih0 = bih0_ref[...]; bhh0 = bhh0_ref[...]
    wih1 = wih1_ref[...]; whh1 = whh1_ref[...]
    bih1 = bih1_ref[...]; bhh1 = bhh1_ref[...]

    def cell(x, h, wih, whh, bih, bhh):
        # gate order: r, z, n  (PyTorch nn.GRU)
        gi_r = jnp.dot(x, wih[0], preferred_element_type=jnp.float32) + bih[0]
        gi_z = jnp.dot(x, wih[1], preferred_element_type=jnp.float32) + bih[1]
        gi_n = jnp.dot(x, wih[2], preferred_element_type=jnp.float32) + bih[2]
        gh_r = jnp.dot(h, whh[0], preferred_element_type=jnp.float32) + bhh[0]
        gh_z = jnp.dot(h, whh[1], preferred_element_type=jnp.float32) + bhh[1]
        gh_n = jnp.dot(h, whh[2], preferred_element_type=jnp.float32) + bhh[2]
        r = jax.nn.sigmoid(gi_r + gh_r)
        z = jax.nn.sigmoid(gi_z + gh_z)
        n = jnp.tanh(gi_n + r * gh_n)
        return (1.0 - z) * n + z * h

    T = x_ref.shape[0]

    def body(t, carry):
        x_t = x_ref[t]                                   # (B, In)
        h0 = cell(x_t, h0_ref[...], wih0, whh0, bih0, bhh0)
        h0_ref[...] = h0
        h1 = cell(h0, h1_ref[...], wih1, whh1, bih1, bhh1)
        h1_ref[...] = h1
        out_ref[t] = h1
        return carry

    lax.fori_loop(0, T, body, 0, unroll=True)


def gru2_forward(x_btd, p):
    """x_btd (B, T, In) -> (B, T, H); 2 stacked GRU layers, batch_first."""
    B, T, In = x_btd.shape
    H = p["whh0"].shape[-1]
    x_tbd = jnp.transpose(x_btd, (1, 0, 2)).astype(jnp.float32)
    out = pl.pallas_call(
        _gru2_kernel,
        out_shape=jax.ShapeDtypeStruct((T, B, H), jnp.float32),
        grid=(1,),
        in_specs=[
            _fullspec((T, B, In)),
            _fullspec((3, In, H)), _fullspec((3, H, H)),
            _fullspec((3, 1, H)), _fullspec((3, 1, H)),
            _fullspec((3, H, H)), _fullspec((3, H, H)),
            _fullspec((3, 1, H)), _fullspec((3, 1, H)),
        ],
        out_specs=_fullspec((T, B, H)),
        scratch_shapes=[pltpu.VMEM((B, H), jnp.float32),
                        pltpu.VMEM((B, H), jnp.float32)],
    )(x_tbd, p["wih0"], p["whh0"], p["bih0"], p["bhh0"],
      p["wih1"], p["whh1"], p["bih1"], p["bhh1"])
    return jnp.transpose(out, (1, 0, 2))


# ---------------------------------------------------------------------------
# masked attention pooling: att = softmax(w . tanh(U h + b)), pooled = att @ H
# ---------------------------------------------------------------------------
def _attn_pool_kernel(h_ref, mask_ref, u_ref, ub_ref, w_ref, att_ref, pooled_ref):
    h = h_ref[0]                                          # (T, D)
    m = mask_ref[0]                                       # (T, 1)
    pre = jnp.tanh(
        jnp.dot(h, u_ref[...], preferred_element_type=jnp.float32) + ub_ref[...])
    scores = jnp.sum(pre * w_ref[...], axis=1, keepdims=True)      # (T, 1)
    scores = jnp.where(m > 0.5, scores, -jnp.inf)
    mx = jnp.max(scores, axis=0, keepdims=True)
    e = jnp.exp(scores - mx)
    att = e / jnp.sum(e, axis=0, keepdims=True)
    att_ref[0] = att
    pooled_ref[0] = jnp.sum(att * h, axis=0, keepdims=True)        # (1, D)


def attention_pool(h_btd, mask_bt, u, ub, w_row):
    B, T, D = h_btd.shape
    mask3 = mask_bt.reshape(B, T, 1).astype(jnp.float32)
    att, pooled = pl.pallas_call(
        _attn_pool_kernel,
        out_shape=(jax.ShapeDtypeStruct((B, T, 1), jnp.float32),
                   jax.ShapeDtypeStruct((B, 1, D), jnp.float32)),
        grid=(B,),
        in_specs=[
            pl.BlockSpec((1, T, D), lambda b: (b, 0, 0)),
            pl.BlockSpec((1, T, 1), lambda b: (b, 0, 0)),
            pl.BlockSpec((D, D), lambda b: (0, 0)),
            pl.BlockSpec((1, D), lambda b: (0, 0)),
            pl.BlockSpec((1, D), lambda b: (0, 0)),
        ],
        out_specs=(pl.BlockSpec((1, T, 1), lambda b: (b, 0, 0)),
                   pl.BlockSpec((1, 1, D), lambda b: (b, 0, 0))),
        compiler_params=pltpu.CompilerParams(dimension_semantics=("parallel",)),
    )(h_btd.astype(jnp.float32), mask3, u, ub, w_row)
    return att.reshape(B, T), pooled.reshape(B, D)


# ---------------------------------------------------------------------------
# pointer gate + sat / sat_diff classifiers
# ---------------------------------------------------------------------------
def _head_kernel(ch_ref, ah_ref, wc_ref, wa_ref, wb_ref,
                 satw_ref, satb_ref, sdw_ref, sdb_ref,
                 ptr_ref, sat_ref, sd_ref):
    ch = ch_ref[...]
    ah = ah_ref[...]
    logit = (jnp.dot(ch, wc_ref[...], preferred_element_type=jnp.float32)
             + jnp.dot(ah, wa_ref[...], preferred_element_type=jnp.float32)
             + wb_ref[...])
    p = jax.nn.sigmoid(logit)                              # (B, 1)
    hidden = ch * p + ah * (1.0 - p)
    ptr_ref[...] = p
    sat_ref[...] = (jnp.dot(hidden, satw_ref[...],
                            preferred_element_type=jnp.float32) + satb_ref[...])
    sd_ref[...] = (jnp.dot(hidden, sdw_ref[...],
                           preferred_element_type=jnp.float32) + sdb_ref[...])


def gated_head(ch, ah, wc, wa, wb, satw, satb, sdw, sdb):
    B, D = ch.shape
    return pl.pallas_call(
        _head_kernel,
        out_shape=(jax.ShapeDtypeStruct((B, 1), jnp.float32),
                   jax.ShapeDtypeStruct((B, 3), jnp.float32),
                   jax.ShapeDtypeStruct((B, 5), jnp.float32)),
        grid=(1,),
        in_specs=[_fullspec((B, D)), _fullspec((B, D)),
                  _fullspec((D, 1)), _fullspec((D, 1)), _fullspec((1, 1)),
                  _fullspec((D, 3)), _fullspec((1, 3)),
                  _fullspec((D, 5)), _fullspec((1, 5))],
        out_specs=(_fullspec((B, 1)), _fullspec((B, 3)), _fullspec((B, 5))),
    )(ch, ah, wc, wa, wb, satw, satb, sdw, sdb)


# ---------------------------------------------------------------------------
# Full SE_DAR_SDE eval forward
# ---------------------------------------------------------------------------
def se_dar_sde_forward(params, input_ids, act_seq):
    B, T, L = input_ids.shape
    E = params["emb"].shape[1]
    D = 2 * E

    flat_ids = input_ids.reshape(B * T, L)
    tok_mask = (flat_ids != 0).astype(jnp.float32)
    attention_mask = (act_seq != -1)

    # BERTBackbone stand-in (see TODO at top of file).
    seq_emb = params["emb"][flat_ids]                        # (B*T, L, E)
    cls = seq_emb[:, 0, :]                                   # (B*T, E)
    h_pool = universal_sentence_embedding(seq_emb, tok_mask)  # Pallas kernel
    private_out = jnp.concatenate([cls, h_pool], axis=-1).reshape(B, T, D)

    # TransformerEncoder: identity stand-in; Dropout: identity in eval.
    H = private_out

    # act classifier (MLP)
    act_flat = mlp_forward(H.reshape(B * T, D),
                           params["mlp_w1"], params["mlp_b1"],
                           params["mlp_w2"], params["mlp_b2"])
    act_res = act_flat.reshape(B, T, -1)

    # content branch
    Hc = gru2_forward(H, params["content_gru"])
    att_c, content_hidden = attention_pool(Hc, attention_mask,
                                           params["U_c"], params["U_c_b"],
                                           params["w_c"])

    # act branch
    Ha = gru2_forward(act_res, params["act_gru"])
    att_a, act_hidden = attention_pool(Ha, attention_mask,
                                       params["U_a"], params["U_a_b"],
                                       params["w_a"])

    # pointer gate + classifiers
    pointer, sat_res, sat_diff_res = gated_head(
        content_hidden, act_hidden,
        params["w_wc"], params["w_wa"], params["w_b"],
        params["sat_w"], params["sat_b"],
        params["sat_diff_w"], params["sat_diff_b"])

    return act_res, sat_diff_res, sat_res, pointer, att_a, att_c


# ---------------------------------------------------------------------------
# Parameter construction (self-contained random init)
# ---------------------------------------------------------------------------
def make_params(key, vocab, E, C):
    D = 2 * E
    Hd = D // 2
    keys = list(jax.random.split(key, 40))
    it = iter(keys)

    def xavier(shape):
        fan_in, fan_out = shape[-2], shape[-1]
        lim = (6.0 / (fan_in + fan_out)) ** 0.5
        return jax.random.uniform(next(it), shape, jnp.float32, -lim, lim)

    def bias(shape):
        return jax.random.normal(next(it), shape, jnp.float32) * 0.1

    def gru_params(in_size, hid):
        lim = 1.0 / (hid ** 0.5)

        def u(shape):
            return jax.random.uniform(next(it), shape, jnp.float32, -lim, lim)

        return {"wih0": u((3, in_size, hid)), "whh0": u((3, hid, hid)),
                "bih0": u((3, 1, hid)), "bhh0": u((3, 1, hid)),
                "wih1": u((3, hid, hid)), "whh1": u((3, hid, hid)),
                "bih1": u((3, 1, hid)), "bhh1": u((3, 1, hid))}

    return {
        "emb": jax.random.normal(next(it), (vocab, E), jnp.float32) * 0.1,
        "mlp_w1": xavier((D, Hd)), "mlp_b1": bias((1, Hd)),
        "mlp_w2": xavier((Hd, C)), "mlp_b2": bias((1, C)),
        "content_gru": gru_params(D, D),
        "act_gru": gru_params(C, D),
        "U_c": xavier((D, D)), "U_c_b": bias((1, D)), "w_c": xavier((1, D)),
        "U_a": xavier((D, D)), "U_a_b": bias((1, D)), "w_a": xavier((1, D)),
        "w_wc": xavier((D, 1)), "w_wa": xavier((D, 1)), "w_b": bias((1, 1)),
        "sat_w": xavier((D, 3)), "sat_b": bias((1, 3)),
        "sat_diff_w": xavier((D, 5)), "sat_diff_b": bias((1, 5)),
    }


# ---------------------------------------------------------------------------
# Pure-JAX reference (mirrors the torch forward, identical stand-ins)
# ---------------------------------------------------------------------------
def ref_forward(params, input_ids, act_seq):
    B, T, L = input_ids.shape
    E = params["emb"].shape[1]
    D = 2 * E
    flat_ids = input_ids.reshape(B * T, L)
    tok_mask = (flat_ids != 0).astype(jnp.float32)
    attention_mask = (act_seq != -1)

    seq_emb = params["emb"][flat_ids]
    cls = seq_emb[:, 0, :]
    sums = jnp.einsum("nle,nl->ne", seq_emb, tok_mask)
    h_pool = sums / jnp.sqrt(jnp.sum(tok_mask, axis=1, keepdims=True))
    H = jnp.concatenate([cls, h_pool], axis=-1).reshape(B, T, D)

    act_flat = jax.nn.relu(
        jax.nn.relu(H.reshape(B * T, D) @ params["mlp_w1"] + params["mlp_b1"])
        @ params["mlp_w2"] + params["mlp_b2"])
    act_res = act_flat.reshape(B, T, -1)

    def gru2(x, p):
        Bx, Tx, _ = x.shape
        hid = p["whh0"].shape[-1]
        h0 = jnp.zeros((Bx, hid), jnp.float32)
        h1 = jnp.zeros((Bx, hid), jnp.float32)

        def cell(xt, h, wih, whh, bih, bhh):
            r = jax.nn.sigmoid(xt @ wih[0] + bih[0] + h @ whh[0] + bhh[0])
            z = jax.nn.sigmoid(xt @ wih[1] + bih[1] + h @ whh[1] + bhh[1])
            n = jnp.tanh(xt @ wih[2] + bih[2] + r * (h @ whh[2] + bhh[2]))
            return (1.0 - z) * n + z * h

        outs = []
        for t in range(Tx):
            h0 = cell(x[:, t], h0, p["wih0"], p["whh0"], p["bih0"], p["bhh0"])
            h1 = cell(h0, h1, p["wih1"], p["whh1"], p["bih1"], p["bhh1"])
            outs.append(h1)
        return jnp.stack(outs, axis=1)

    def attn(Hseq, U, Ub, w_row):
        pre = jnp.tanh(Hseq @ U + Ub)
        scores = jnp.sum(pre * w_row, axis=-1)
        scores = jnp.where(attention_mask, scores, -jnp.inf)
        att = jax.nn.softmax(scores, axis=1)
        pooled = jnp.einsum("btd,bt->bd", Hseq, att)
        return att, pooled

    Hc = gru2(H, params["content_gru"])
    att_c, content_hidden = attn(Hc, params["U_c"], params["U_c_b"], params["w_c"])
    Ha = gru2(act_res, params["act_gru"])
    att_a, act_hidden = attn(Ha, params["U_a"], params["U_a_b"], params["w_a"])

    logit = (content_hidden @ params["w_wc"] + act_hidden @ params["w_wa"]
             + params["w_b"])
    pointer = jax.nn.sigmoid(logit)
    hidden = content_hidden * pointer + act_hidden * (1.0 - pointer)
    sat_res = hidden @ params["sat_w"] + params["sat_b"]
    sat_diff_res = hidden @ params["sat_diff_w"] + params["sat_diff_b"]
    return act_res, sat_diff_res, sat_res, pointer, att_a, att_c


if __name__ == "__main__":
    key = jax.random.PRNGKey(0)
    kp, kids, kacts = jax.random.split(key, 3)

    B, T, L = 2, 8, 12          # batch, dialog_len, utt_len
    V, E, C = 50, 16, 4         # vocab, token-emb dim (d_model = 2E = 32), class_num

    params = make_params(kp, V, E, C)

    input_ids = jax.random.randint(kids, (B, T, L), 1, V, dtype=jnp.int32)
    input_ids = input_ids.at[:, :, L - 3:].set(0)          # utterance padding (id 0)

    act_seq = jax.random.randint(kacts, (B, T), 0, C, dtype=jnp.int32)
    act_seq = act_seq.at[1, T - 2:].set(-1)                # dialog-turn padding (-1)

    outs = jax.block_until_ready(se_dar_sde_forward(params, input_ids, act_seq))
    refs = jax.block_until_ready(ref_forward(params, input_ids, act_seq))

    names = ("act_res", "sat_diff_res", "sat_res", "pointer", "att_a", "att_c")
    for name, o, r in zip(names, outs, refs):
        assert o.shape == r.shape, (name, o.shape, r.shape)
        assert jnp.allclose(o, r, rtol=1e-3, atol=1e-4), (
            name, float(jnp.max(jnp.abs(o - r))))

    print("KERNEL_OK")
</pallas_src>

<mosaic_0001>
module attributes {stable_mosaic.version = 11 : i64} {
  func.func @_use_kernel(%arg0: i32, %arg1: memref<1x12x16xf32, #tpu.memory_space<vmem>>, %arg2: memref<1x12x1xf32, #tpu.memory_space<vmem>>, %arg3: memref<1x1x16xf32, #tpu.memory_space<vmem>>) attributes {dimension_semantics = [#tpu.dimension_semantics<parallel>], iteration_bounds = array<i64: 16>, scalar_prefetch = 0 : i64, scratch_operands = 0 : i64, tpu.core_type = #tpu.core_type<tc>, window_params = [{transform_indices = @transform_0, window_bounds = array<i64: 1, 12, 16>}, {transform_indices = @transform_1, window_bounds = array<i64: 1, 12, 1>}, {transform_indices = @transform_2, window_bounds = array<i64: 1, 1, 16>}]} {
    %c0 = arith.constant 0 : index
    %c0_0 = arith.constant 0 : index
    %c0_1 = arith.constant 0 : index
    %0 = vector.load %arg1[%c0, %c0_0, %c0_1] : memref<1x12x16xf32, #tpu.memory_space<vmem>>, vector<1x12x16xf32>
    %1 = vector.shape_cast %0 : vector<1x12x16xf32> to vector<12x16xf32>
    %c0_2 = arith.constant 0 : index
    %c0_3 = arith.constant 0 : index
    %c0_4 = arith.constant 0 : index
    %2 = vector.load %arg2[%c0_2, %c0_3, %c0_4] : memref<1x12x1xf32, #tpu.memory_space<vmem>>, vector<1x12x1xf32>
    %3 = vector.shape_cast %2 : vector<1x12x1xf32> to vector<12x1xf32>
    %4 = vector.broadcast %3 : vector<12x1xf32> to vector<12x16xf32>
    %5 = arith.mulf %1, %4 : vector<12x16xf32>
    %cst = arith.constant dense<0.000000e+00> : vector<16xf32>
    %6 = vector.multi_reduction <add>, %5, %cst [0] : vector<12x16xf32> to vector<16xf32>
    %7 = vector.shape_cast %6 : vector<16xf32> to vector<1x16xf32>
    %cst_5 = arith.constant dense<0.000000e+00> : vector<1xf32>
    %8 = vector.multi_reduction <add>, %3, %cst_5 [0] : vector<12x1xf32> to vector<1xf32>
    %9 = vector.shape_cast %8 : vector<1xf32> to vector<1x1xf32>
    %10 = math.sqrt %9 : vector<1x1xf32>
    %11 = vector.broadcast %10 : vector<1x1xf32> to vector<1x16xf32>
    %12 = arith.divf %7, %11 : vector<1x16xf32>
    %c0_6 = arith.constant 0 : index
    %c0_7 = arith.constant 0 : index
    %c0_8 = arith.constant 0 : index
    %13 = vector.load %arg3[%c0_6, %c0_7, %c0_8] : memref<1x1x16xf32, #tpu.memory_space<vmem>>, vector<1x1x16xf32>
    %14 = vector.shape_cast %13 : vector<1x1x16xf32> to vector<1x16xf32>
    %15 = vector.shape_cast %12 : vector<1x16xf32> to vector<1x1x16xf32>
    tpu.vector_store %arg3[%c0_6, %c0_7, %c0_8], %15 {strides = array<i32>} : memref<1x1x16xf32, #tpu.memory_space<vmem>>, vector<1x1x16xf32>,
    return
  }
  func.func @transform_0(%arg0: i32) -> (i32, i32, i32) {
    %c0_i32 = arith.constant 0 : i32
    %c0_i32_0 = arith.constant 0 : i32
    %c0_i32_1 = arith.constant 0 : i32
    return %arg0, %c0_i32, %c0_i32_0 : i32, i32, i32
  }
  func.func @transform_1(%arg0: i32) -> (i32, i32, i32) {
    %c0_i32 = arith.constant 0 : i32
    %c0_i32_0 = arith.constant 0 : i32
    %c0_i32_1 = arith.constant 0 : i32
    return %arg0, %c0_i32, %c0_i32_0 : i32, i32, i32
  }
  func.func @transform_2(%arg0: i32) -> (i32, i32, i32) {
    %c0_i32 = arith.constant 0 : i32
    %c0_i32_0 = arith.constant 0 : i32
    %c0_i32_1 = arith.constant 0 : i32
    return %arg0, %c0_i32, %c0_i32_0 : i32, i32, i32
  }
}

</mosaic_0001>

<bundles_post_ra>
// kernel: tpu_custom_call.1
= control target key start
LH: loop header
LB: loop body
LE: loop exit
PB: predicated region body
PF: predicated region fallthrough
CT: control target
= control target key end

     0   :  { %7 = vsyncpa [#allocation3], 0  ;;  %s541_s0 = inlined_call_operand.vmem [shape: f32[16,12,16], index: 0, kind: input, shape index: {}]   ;;  %s542_s1 = inlined_call_operand.vmem [shape: f32[16,12,1], index: 1, kind: input, shape index: {}]   ;;  %s543_s2 = inlined_call_operand.hbm [shape: f32[16,1,16], index: 2, kind: output, shape index: {}]  }
   0x1   :  { %9 = vsyncpa [#allocation3 + $0x1], 0  ;;  %s435_s9 = smov 0   ;;  %s437_s10 = smov 0  }
   0x2   :  { %s439_s11 = smov 0   ;;  %s441_s12 = smov 0  }
   0x3 LB: > { %s456_s13 = sadd.s32 4294967295, %s416_s12   ;;  %s295_s14 = sadd.s32 4294967294, %s416_s12   ;;  %s416_s12 = sphi %s441_s12, %s549_s12   ;;  %s412_s11 = sphi %s439_s11, %s548_s11   ;;  %s408_s10 = sphi %s437_s10, %s547_s10   ;;  %s404_s9 = sphi %s435_s9, %s546_s9  }
   0x4   : > { %s460_s15 = sadd.s32 1, %s416_s12   ;;  %s74_s16 = sadd.s32 1, %s412_s11 }
   0x5   : > { %s71_s17 = ssub.s32 %s416_s12, %s460_s15  ;;  %p84_p0 = scmp.ne.s32.totalorder %s412_s11, %s408_s10 }
   0x6   : > { %p72_p1 = scmp.eq.s32.totalorder %s71_s17, 0  ;;  %p85_p2 = scmp.eq.s32.totalorder %s456_s13, 15 }
   0x7   : > { %p90_p3 = scmp.ne.s32.totalorder %s408_s10, %s404_s9  ;;  %p91_p4 = scmp.eq.s32.totalorder %s295_s14, 15 }
   0x8   : > { %s471_s18 = scalar_select %p72_p1, %s412_s11, %s74_s16  }
   0x9   : > { %p473_p5 = por %p85_p2, %p84_p0  ;;  %p477_p6 = por %p91_p4, %p90_p3 }
   0xa   : > { %p298_p7 = scmp.ge.s32.totalorder %s416_s12, 1  ;;  %p125_p8 = scmp.lt.s32.totalorder %s416_s12, 17 }
   0xc   : > { %p126_p9 = pnand %p298_p7, %p125_p8 }
   0xd   : > { %p151_p10 = scmp.lt.s32.totalorder (!%p126_p9), %s456_s13, 15  ;;  %v418_v0 = vmov (!%p126_p9), 0   ;;  %vm188_vm0 = vcmask (!%p126_p9), 7168   ;;  %vm190_vm1 = vcmask (!%p126_p9), 3072   ;;  %vm177_vm4 = vcmask (!%p126_p9), 130048   ;;  %s149_s29 = sand.u32 (!%p126_p9), 1, %s408_s10  }
   0xe   : > { %129 = sbr.rel (%p126_p9) target bundleno = 211 (0xd3), region = 28  ;;  %348 = vset.pattern.permute.xlu0 (!%p126_p9), %v418_v0  ;;  %349 = vset.pattern.permute.xlu1 (!%p126_p9), %v418_v0  ;;  %vm179_vm5 = vcmask (!%p126_p9), 125952   ;;  %s303_s30 = sshll.u32 (!%p126_p9), %s456_s13, 4  ;;  %vm213_vm6 = vcmask (!%p126_p9), 122880  }
   0xf   : > { %s150_s3 = scalar_lea.vmem (!%p126_p9), [#allocation2], %s149_s29  ;;  %s499_s7 = scalar_lea.hbm (!%p126_p9), %s543_s2, %s303_s30 }
  0x10   : > { %s228_s4 = sshll.u32 (!%p126_p9), %s150_s3, 4  ;;  %s216_s8 = scalar_lea.sflag (!%p126_p9), [#allocation3], %s149_s29  ;;  %s501_s4 = int_to_ptr.vmem [resolvable:$true] %s228_s4 }
  0x11   : > { %s354_s14 = scalar_lea.vmem (!%p126_p9), %s501_s4, 16 }
  0x12   : > { %p355_p11 = scmp.ne.s32.totalorder (!%p126_p9), %s501_s4, %s354_s14 }
  0x14   : > { %p356_p12 = pnand (!%p126_p9), %p355_p11, %p473_p5 }
  0x15   : > { %s485_s21 = scalar_select %p151_p10, %s456_s13, 15 }
  0x16   : > { %p357_p13 = pneg %p356_p12  ;;  %s419_s13 = smov [#allocation2]  }
  0x17   : > { %s306_s22 = sshll.u32 %s485_s21, 4  ;;  %s358_s16 = sshll.u32 %s419_s13, 4  ;;  %s359_s16 = int_to_ptr.vmem [resolvable:$false] %s358_s16 }
  0x18   : > { %s160_s25 = scalar_lea.vmem %s542_s1, %s306_s22  ;;  %s155_s28 = scalar_lea.vmem %s541_s0, %s306_s22 }
  0x19   : > { %v163_v1 = vld [vmem:[%s160_s25] sm:$0xff]  ;;  %v164_v2 = vld [vmem:[%s160_s25 + $0x8] sm:$0xf]  ;;  %s360_s17 = scalar_lea.vmem %s359_s16, 32  ;;  %p361_p0 = scmp.lt.s32.totalorder %s501_s4, %s359_s16 }
  0x1a   : > { %167 = vperm.xlu0 %348, %v163_v1   ;;  %v189_v3 = vsel %vm188_vm0, %v163_v1, 0.0  ;;  %v191_v4 = vsel %vm190_vm1, %v164_v2, 0.0  ;;  %v161_v18 = vld [vmem:[%s155_s28] sm:$0xff]  ;;  %v162_v20 = vld [vmem:[%s155_s28 + $0x8] sm:$0xf]  ;;  %p362_p1 = scmp.lt.s32.totalorder %s360_s17, %s354_s14 }
  0x1b   : > { %v192_v5 = vadd.f32 %v191_v4, %v189_v3 }
  0x1c   : > { %p363_p2 = por %p362_p1, %p361_p0 }
  0x1d   : > { %v193_v6 = vrot.slane %v192_v5, 4 }
  0x1e   : > { %172 = vperm.xlu0 %348, %v164_v2   ;;  %p364_p3 = pnand %p363_p2, %p357_p13 }
  0x1f   : > { %v194_v7 = vadd.f32 %v193_v6, %v192_v5 }
  0x21   : > { %v195_v8 = vrot.slane %v194_v7, 2 }
  0x23   : > { %v196_v9 = vadd.f32 %v195_v8, %v194_v7 }
  0x25   : > { %v197_v10 = vrot.slane %v196_v9, 1 }
  0x27   : > { %v198_v11 = vadd.f32 %v197_v10, %v196_v9 }
  0x29   : > { %350 = vrsqrt.f32 %v198_v11  ;;  %vm201_vm2 = vcmp.eq.f32.partialorder %v198_v11, inf  ;;  %v204_v13 = vand.u32 2147483648, %v198_v11  ;;  %vm203_vm3 = vcmp.eq.f32.partialorder %v198_v11, 0.0 }
  0x33   : > { %v351_v12 = vpop.eup %350 }
  0x34   : > { %v200_v14 = vmul.f32 %v351_v12, %v198_v11 }
  0x36   : > { %v202_v15 = vsel %vm201_vm2, %v198_v11, %v200_v14 }
  0x37   : > { %v205_v16 = vsel %vm203_vm3, %v204_v13, %v202_v15 }
  0x38   : > { %208 = vperm.xlu1 %349, %v205_v16  }
  0x99   : > { %v168_v17 = vpop.permute.xlu0 %167 }
  0x9a   : > { %v175_v21 = vmul.f32 %v168_v17, %v161_v18 }
  0x9c   : > { %v178_v23 = vsel %vm177_vm4, %v175_v21, 0.0 }
  0x9d   : > { %v173_v19 = vpop.permute.xlu0 %172 }
  0x9e   : > { %v176_v22 = vmul.f32 %v173_v19, %v162_v20 }
  0xa0   : > { %v180_v24 = vsel %vm179_vm5, %v176_v22, 0.0 }
  0xa1   : > { %v181_v25 = vadd.f32 %v180_v24, %v178_v23 }
  0xa3   : > { %v182_v26 = vrot.slane %v181_v25, 4 }
  0xa5   : > { %v183_v27 = vadd.f32 %v182_v26, %v181_v25 }
  0xa7   : > { %v184_v28 = vrot.slane %v183_v27, 2 }
  0xa9   : > { %v185_v30 = vadd.f32 %v184_v28, %v183_v27 }
  0xab   : > { %v186_v31 = vrot.slane %v185_v30, 1 }
  0xad   : > { %v187_v32 = vadd.f32 %v186_v31, %v185_v30 }
  0xb7   : > { %v209_v29 = vpop.permute.xlu1 %208 }
  0xb8   : > { %352 = vrcp.f32 %v209_v29 }
  0xc2   : > { %v353_v33 = vpop.eup %352 }
  0xc3   : > { %v212_v34 = vmul.f32 %v353_v33, %v187_v32 }
  0xc5   : > { %214 = vst.msk [vmem:[%s150_s3] sm:$0x1] %vm213_vm6, %v212_v34 }
  0xc6   : > { %367 = shalt.err (!%p364_p3)
}
  0xc7   : > { %s368_s21 = scalar_lea.hbm %s499_s7, 16  ;;  %s372_s24 = scalar_lea.hbm %s543_s2, 256 }
  0xc8   : > { %p369_p4 = scmp.ne.s32.totalorder %s499_s7, %s368_s21  ;;  %p373_p9 = scmp.lt.u32.totalorder %s499_s7, %s543_s2 }
  0xc9   : > { %p374_p10 = scmp.lt.u32.totalorder %s372_s24, %s368_s21  ;;  %p376_p12 = scmp.lt.u32.totalorder %s368_s21, %s499_s7 }
  0xca   : > { %p370_p7 = pnand %p369_p4, %p473_p5 }
  0xcb   : > { %p375_p11 = por %p374_p10, %p373_p9 }
  0xcc   : > { %p371_p8 = pneg %p370_p7 }
  0xcd   : > { %p377_p13 = por %p376_p12, %p375_p11 }
  0xcf   : > { %p378_p0 = pnand %p377_p13, %p371_p8 }
  0xd1   : > { %381 = shalt.err (!%p378_p0)
}
  0xd2   : > { %308 = dma.vmem_to_hbm [thread:$0]  (%p473_p5), %s501_s4, 16, %s499_s7, %s216_s8  }
  0xd3 PF: > { %p314_p1 = scmp.ge.s32.totalorder %s416_s12, 2  ;;  %s240_s27 = sand.u32 1, %s404_s9  }
  0xd4   : > { %s241_s28 = scalar_lea.sflag [#allocation3], %s240_s27 }
  0xd5   : > { %p311_p2 = pnand %p314_p1, %p477_p6 }
  0xd7   : > { %399 = dma.done.wait (!%p311_p2), %s241_s28, 16  }
  0xd8   : > { %401 = vsyncadd (!%p311_p2), %s241_s28, 4294967280  ;;  %p12_p3 = scmp.ge.s32.totalorder %s460_s15, 18   ;;  %s546_s9 = smov %s408_s10 }
  0xd9   : > { %s547_s10 = smov %s412_s11  ;;  %s548_s11 = smov %s471_s18 }
  0xda   : > { %s549_s12 = smov %s460_s15  ;;  %14 = sbr.rel (!%p12_p3) target bundleno = 3 (0x3), region = 66 }
  0xe1   :  { %245 = vsyncpa [#allocation3], 1 }
  0xe2   :  { %247 = vsyncpa [#allocation3 + $0x1], 1 }

</bundles_post_ra>
